<compile_context>
chip_gen: v7x
topology: tpu7x:2x2x1
jax: 0.10.0
libtpu: 0.0.40
codegen_flags: <defaults>
</compile_context>

<pallas_src>
import math

import jax
import jax.numpy as jnp
from jax.experimental import pallas as pl
from jax.experimental.pallas import tpu as pltpu


def _round_up(x, m):
    return ((x + m - 1) // m) * m


# --------------------------------- kernel ----------------------------------- #
def _make_projector_kernel(n_mid):
    """n_mid = number of middle (Linear+ReLU) layers after the first one."""

    def kernel(*refs):
        x_ref, st_ref, w1f_ref, w1s_ref, b1_ref = refs[:5]
        mid_refs = refs[5:5 + 2 * n_mid]
        wout_ref = refs[5 + 2 * n_mid]
        out_ref = refs[6 + 2 * n_mid]
        acc_ref = refs[7 + 2 * n_mid]

        k = pl.program_id(1)

        @pl.when(k == 0)
        def _init():
            acc_ref[...] = jnp.zeros_like(acc_ref)

        # First Linear with the circular conv folded in: tiled contraction over
        # the S*E axis, accumulated in f32 VMEM scratch.
        acc_ref[...] += jnp.dot(x_ref[...], w1f_ref[...],
                                preferred_element_type=jnp.float32)

        @pl.when(k == pl.num_programs(1) - 1)
        def _finalize():
            # stats half of the first Linear + bias, then ReLU.
            h = (acc_ref[...]
                 + jnp.dot(st_ref[...], w1s_ref[...],
                           preferred_element_type=jnp.float32)
                 + b1_ref[...])
            h = jnp.maximum(h, 0.0)
            # middle Linear+ReLU layers (unrolled; weights stay VMEM-resident).
            for i in range(n_mid):
                w = mid_refs[2 * i][...]
                b = mid_refs[2 * i + 1][...]
                h = jnp.dot(h.astype(w.dtype), w,
                            preferred_element_type=jnp.float32) + b
                h = jnp.maximum(h, 0.0)
            # final Linear (no bias); lane-padded columns are zero.
            y = jnp.dot(h.astype(wout_ref.dtype), wout_ref[...],
                        preferred_element_type=jnp.float32)
            out_ref[...] = y.astype(out_ref.dtype)

    return kernel


# ----------------------- one-time weight preparation ------------------------ #
def prepare_projector(params, *, compute_dtype=jnp.bfloat16, lane_pad=128,
                      max_k_tile=2048):
    """Fold the circular conv into the first Linear, pad lane dims to
    `lane_pad`, cast matmul operands to `compute_dtype` (biases stay f32).
    Run once; the result is reused by every projector_pallas call."""
    conv_w = jnp.asarray(params["conv_w"], jnp.float32)            # (1, S, K)
    linears = [(jnp.asarray(w, jnp.float32), jnp.asarray(b, jnp.float32))
               for (w, b) in params["linears"]]
    w_out = jnp.asarray(params["w_out"], jnp.float32)              # (out_dim, H_last)

    _, S, ksz = conv_w.shape
    E = linears[0][0].shape[1] // 2
    pad = 1  # torch >= 1.5.0 path of the original module
    # Length-preserving circular conv is the only config the module's cat() admits.
    assert ksz == 2 * pad + 1, "conv fold assumes kernel_size == 3 / padding == 1"

    w1, b1 = linears[0]
    H1 = w1.shape[0]
    w1_t = w1.T                                                    # (2E, H1)
    w1c, w1s = w1_t[:E], w1_t[E:]                                  # conv / stats halves

    # Fold:  x.reshape(B, S*E) @ W1f  ==  circular_conv(x) @ W1c
    #   W1f[s*E + j, h] = sum_k conv_w[0, s, k] * W1c[(j - k + pad) mod E, h]
    w1f = jnp.zeros((S, E, H1), jnp.float32)
    for k in range(ksz):
        w1f = w1f + conv_w[0, :, k][:, None, None] * jnp.roll(w1c, k - pad, axis=0)[None]
    w1f = w1f.reshape(S * E, H1)

    # Contraction (S*E) tiling decision; zero-pad the weight's K axis if tiled.
    k_dim = S * E
    if k_dim <= max_k_tile:
        tk, k_pad_len = k_dim, k_dim
    else:
        tk = max_k_tile
        k_pad_len = _round_up(k_dim, tk)

    h1p = _round_up(H1, lane_pad)
    w1f_p = jnp.zeros((k_pad_len, h1p), jnp.float32).at[:k_dim, :H1].set(w1f)
    w1s_p = jnp.zeros((E, h1p), jnp.float32).at[:, :H1].set(w1s)
    b1_p = jnp.zeros((1, h1p), jnp.float32).at[0, :H1].set(b1)

    mids = []
    h_prev, h_prev_p = H1, h1p
    for (w, b) in linears[1:]:
        ho = w.shape[0]
        hop = _round_up(ho, lane_pad)
        w_p = jnp.zeros((h_prev_p, hop), jnp.float32).at[:h_prev, :ho].set(w.T)
        b_p = jnp.zeros((1, hop), jnp.float32).at[0, :ho].set(b)
        mids.append((w_p.astype(compute_dtype), b_p))
        h_prev, h_prev_p = ho, hop

    out_dim = w_out.shape[0]
    out_p = _round_up(out_dim, lane_pad)
    w_out_p = jnp.zeros((h_prev_p, out_p), jnp.float32).at[:h_prev, :out_dim].set(w_out.T)

    return {
        "w1f": w1f_p.astype(compute_dtype),
        "w1s": w1s_p.astype(compute_dtype),
        "b1": b1_p,
        "mids": mids,
        "w_out": w_out_p.astype(compute_dtype),
        "S": S, "E": E, "k_dim": k_dim, "k_pad": k_pad_len, "tk": tk,
        "out_dim": out_dim, "compute_dtype": compute_dtype,
    }


# --------------------------------- wrapper ----------------------------------- #
def projector_pallas(x, stats, prep, *, block_b=128):
    """Fused Projector forward. x:[B,S,E], stats:[B,1,E] -> y:[B,out_dim] (f32)."""
    B, S, E = x.shape
    assert S == prep["S"] and E == prep["E"]
    cd = prep["compute_dtype"]
    k_dim, k_pad_len, tk = prep["k_dim"], prep["k_pad"], prep["tk"]
    w1f, w1s, b1 = prep["w1f"], prep["w1s"], prep["b1"]
    mids, w_out = prep["mids"], prep["w_out"]
    out_dim = prep["out_dim"]
    h1p = w1f.shape[1]
    out_p = w_out.shape[1]
    n_mid = len(mids)

    x_flat = x.reshape(B, k_dim).astype(cd)
    st_flat = stats.reshape(B, E).astype(cd)
    if k_pad_len != k_dim:
        # Zero-pad the contraction so the ragged last K block contributes nothing.
        # TODO(synk): replace with an in-kernel masked tail to avoid this HBM copy.
        x_flat = jnp.pad(x_flat, ((0, 0), (0, k_pad_len - k_dim)))
    n_k = k_pad_len // tk

    # Batch tiling: >=2 tiles when B allows (v7x megacore), 16-row alignment for
    # bf16 sublane packing. Ragged tails use Pallas partial blocks (no jnp.pad of
    # x/stats): garbage rows only feed output rows that are never written back.
    if B < 16:
        tb = B
    elif B <= block_b:
        tb = _round_up(pl.cdiv(B, 2), 16)
    else:
        tb = block_b
    n_b = pl.cdiv(B, tb)

    # Explicit scoped-VMEM budget (v7x: 64 MiB/TC; v5e scoped default: 16 MiB).
    itm = jnp.dtype(cd).itemsize
    w1f_resident = w1f.size if n_k == 1 else 2 * tk * h1p
    const_bytes = ((w1s.size + w_out.size + sum(w.size for w, _ in mids)) * itm
                   + (b1.size + sum(b.size for _, b in mids)) * 4)
    est = (w1f_resident * itm + 2 * const_bytes
           + 2 * (tb * tk + tb * E) * itm
           + 2 * tb * out_p * 4 + tb * h1p * 4)
    vmem_limit = int(min(max(32 << 20, int(est * 1.25) + (2 << 20)), 112 << 20))

    flat_mids = [a for wb in mids for a in wb]
    args = (x_flat, st_flat, w1f, w1s, b1, *flat_mids, w_out)

    def build_call(single_buffer_weights):
        def const_spec(shape):
            # Constant-index weights never change across grid steps: one buffer.
            if single_buffer_weights:
                return pl.BlockSpec(shape, lambda i, k: (0, 0),
                                    pipeline_mode=pl.Buffered(1))
            return pl.BlockSpec(shape, lambda i, k: (0, 0))

        w1f_spec = (const_spec((tk, h1p)) if n_k == 1
                    else pl.BlockSpec((tk, h1p), lambda i, k: (k, 0)))
        in_specs = [
            pl.BlockSpec((tb, tk), lambda i, k: (i, k)),       # x (flattened)
            pl.BlockSpec((tb, E), lambda i, k: (i, 0)),        # stats
            w1f_spec,                                          # folded conv + Linear1
            const_spec(w1s.shape),                             # stats half of Linear1
            const_spec(b1.shape),
        ]
        for (w, b) in mids:
            in_specs += [const_spec(w.shape), const_spec(b.shape)]
        in_specs.append(const_spec(w_out.shape))

        return pl.pallas_call(
            _make_projector_kernel(n_mid),
            out_shape=jax.ShapeDtypeStruct((B, out_p), jnp.float32),
            grid_spec=pltpu.PrefetchScalarGridSpec(
                num_scalar_prefetch=0,
                grid=(n_b, n_k),                               # reduction axis last
                in_specs=in_specs,
                out_specs=pl.BlockSpec((tb, out_p), lambda i, k: (i, 0)),
                scratch_shapes=[pltpu.VMEM((tb, h1p), jnp.float32)],
            ),
            compiler_params=pltpu.CompilerParams(
                dimension_semantics=("parallel", "arbitrary"),
                vmem_limit_bytes=vmem_limit,
            ),
        )

    try:
        out = jax.block_until_ready(build_call(True)(*args))
    except Exception:
        # pl.Buffered(1) single-buffering is a VMEM-only optimization; fall back
        # to default double buffering if this JAX/Mosaic build rejects it.
        out = build_call(False)(*args)

    return out[:, :out_dim]


# --------------------------------- reference --------------------------------- #
def projector_ref(x, stats, params):
    """Pure-JAX reference mirroring the PyTorch forward."""
    B, S, E = x.shape
    conv_w = params["conv_w"][0]                                  # (S, K)
    ksz = conv_w.shape[-1]
    xp = jnp.concatenate([x[:, :, -1:], x, x[:, :, :1]], axis=-1)  # circular pad 1
    conv_out = jnp.zeros((B, E), dtype=jnp.float32)
    for k in range(ksz):
        conv_out = conv_out + jnp.einsum("bse,s->be", xp[:, :, k:k + E], conv_w[:, k])
    z = jnp.concatenate([conv_out, stats[:, 0, :]], axis=-1)       # cat(dim=1)+view
    h = z
    for (w, b) in params["linears"]:
        h = jax.nn.relu(h @ w.T + b)
    return h @ params["w_out"].T


def init_params(key, enc_in, seq_len, hidden_dims, hidden_layers, output_dim,
                kernel_size=3):
    n_lin = hidden_layers
    keys = jax.random.split(key, 2 + 2 * n_lin)
    conv_w = (jax.random.normal(keys[0], (1, seq_len, kernel_size), jnp.float32)
              / math.sqrt(seq_len * kernel_size))
    dims = [2 * enc_in] + list(hidden_dims[:hidden_layers])
    linears = []
    for i in range(n_lin):
        w = (jax.random.normal(keys[1 + 2 * i], (dims[i + 1], dims[i]), jnp.float32)
             / math.sqrt(dims[i]))
        b = jax.random.normal(keys[2 + 2 * i], (dims[i + 1],), jnp.float32) * 0.02
        linears.append((w, b))
    w_out = (jax.random.normal(keys[-1], (output_dim, dims[-1]), jnp.float32)
             / math.sqrt(dims[-1]))
    return {"conv_w": conv_w, "linears": linears, "w_out": w_out}


if __name__ == "__main__":
    # Small shapes consistent with Projector(enc_in, seq_len, hidden_dims,
    # hidden_layers, output_dim).
    B, seq_len, enc_in = 4, 8, 16
    hidden_dims = [32, 32]
    hidden_layers = 2
    output_dim = 8   # e.g. delta-learner head (tau-learner would use output_dim=1)

    key = jax.random.PRNGKey(0)
    kx, ks, kp = jax.random.split(key, 3)
    x = jax.random.normal(kx, (B, seq_len, enc_in), jnp.float32)
    stats = jax.random.normal(ks, (B, 1, enc_in), jnp.float32)
    params = init_params(kp, enc_in, seq_len, hidden_dims, hidden_layers, output_dim)

    y_ref = projector_ref(x, stats, params)

    # f32 path: exact-math check of the conv fold / padding / tiling plumbing.
    prep32 = prepare_projector(params, compute_dtype=jnp.float32)
    y32 = jax.block_until_ready(projector_pallas(x, stats, prep32))
    assert y32.shape == (B, output_dim)
    assert jnp.allclose(y32, y_ref, atol=1e-4, rtol=1e-4), "f32 output mismatch"

    # bf16 path (default): halves HBM traffic & VMEM; f32 MXU accumulation.
    prep16 = prepare_projector(params)
    y16 = jax.block_until_ready(projector_pallas(x, stats, prep16))
    assert y16.shape == (B, output_dim)
    assert jnp.allclose(y16, y_ref, atol=5e-2, rtol=5e-2), "bf16 output mismatch"

    print("KERNEL_OK")
</pallas_src>

<mosaic_0001>
module attributes {stable_mosaic.version = 11 : i64} {
  func.func @kernel(%arg0: i32, %arg1: i32, %arg2: memref<4x128xf32, #tpu.memory_space<vmem>>, %arg3: memref<4x16xf32, #tpu.memory_space<vmem>>, %arg4: memref<128x128xf32, #tpu.memory_space<vmem>>, %arg5: memref<16x128xf32, #tpu.memory_space<vmem>>, %arg6: memref<1x128xf32, #tpu.memory_space<vmem>>, %arg7: memref<128x128xf32, #tpu.memory_space<vmem>>, %arg8: memref<1x128xf32, #tpu.memory_space<vmem>>, %arg9: memref<128x128xf32, #tpu.memory_space<vmem>>, %arg10: memref<4x128xf32, #tpu.memory_space<vmem>>, %arg11: memref<4x128xf32, #tpu.memory_space<vmem>>) attributes {dimension_semantics = [#tpu.dimension_semantics<parallel>, #tpu.dimension_semantics<arbitrary>], iteration_bounds = array<i64: 1, 1>, scalar_prefetch = 0 : i64, scratch_operands = 1 : i64, tpu.core_type = #tpu.core_type<tc>, window_params = [{transform_indices = @transform_0, window_bounds = array<i64: 4, 128>}, {transform_indices = @transform_1, window_bounds = array<i64: 4, 16>}, {pipeline_mode = #tpu.pipeline_mode<synchronous>, transform_indices = @transform_2, window_bounds = array<i64: 128, 128>}, {pipeline_mode = #tpu.pipeline_mode<synchronous>, transform_indices = @transform_3, window_bounds = array<i64: 16, 128>}, {pipeline_mode = #tpu.pipeline_mode<synchronous>, transform_indices = @transform_4, window_bounds = array<i64: 1, 128>}, {pipeline_mode = #tpu.pipeline_mode<synchronous>, transform_indices = @transform_5, window_bounds = array<i64: 128, 128>}, {pipeline_mode = #tpu.pipeline_mode<synchronous>, transform_indices = @transform_6, window_bounds = array<i64: 1, 128>}, {pipeline_mode = #tpu.pipeline_mode<synchronous>, transform_indices = @transform_7, window_bounds = array<i64: 128, 128>}, {transform_indices = @transform_8, window_bounds = array<i64: 4, 128>}]} {
    %c0_i32 = arith.constant 0 : i32
    %0 = arith.cmpi eq, %arg1, %c0_i32 : i32
    %1 = arith.extui %0 : i1 to i32
    %c0_i32_0 = arith.constant 0 : i32
    %2 = arith.cmpi ne, %1, %c0_i32_0 : i32
    scf.if %2 {
      %cst_10 = arith.constant 0.000000e+00 : f32
      %12 = vector.broadcast %cst_10 : f32 to vector<4x128xf32>
      %c0_11 = arith.constant 0 : index
      %c0_12 = arith.constant 0 : index
      %13 = vector.load %arg11[%c0_11, %c0_12] : memref<4x128xf32, #tpu.memory_space<vmem>>, vector<4x128xf32>
      tpu.vector_store %arg11[%c0_11, %c0_12], %12 {strides = array<i32>} : memref<4x128xf32, #tpu.memory_space<vmem>>, vector<4x128xf32>,
    } else {
    }
    %c0 = arith.constant 0 : index
    %c0_1 = arith.constant 0 : index
    %3 = vector.load %arg11[%c0, %c0_1] : memref<4x128xf32, #tpu.memory_space<vmem>>, vector<4x128xf32>
    %c0_2 = arith.constant 0 : index
    %c0_3 = arith.constant 0 : index
    %4 = vector.load %arg2[%c0_2, %c0_3] : memref<4x128xf32, #tpu.memory_space<vmem>>, vector<4x128xf32>
    %c0_4 = arith.constant 0 : index
    %c0_5 = arith.constant 0 : index
    %5 = vector.load %arg4[%c0_4, %c0_5] : memref<128x128xf32, #tpu.memory_space<vmem>>, vector<128x128xf32>
    %cst = arith.constant dense<0.000000e+00> : vector<4x128xf32>
    %6 = tpu.matmul %4, %5, %cst {dimension_numbers = #tpu.dot_dimension_numbers<[1], [0], [0], [1], [0, 0, 1, 1], [], []>} : vector<4x128xf32>, vector<128x128xf32>, vector<4x128xf32> -> vector<4x128xf32>
    %7 = arith.addf %3, %6 : vector<4x128xf32>
    %c0_6 = arith.constant 0 : index
    %c0_7 = arith.constant 0 : index
    %8 = vector.load %arg11[%c0_6, %c0_7] : memref<4x128xf32, #tpu.memory_space<vmem>>, vector<4x128xf32>
    tpu.vector_store %arg11[%c0_6, %c0_7], %7 {strides = array<i32>} : memref<4x128xf32, #tpu.memory_space<vmem>>, vector<4x128xf32>,
    %c0_i32_8 = arith.constant 0 : i32
    %9 = arith.cmpi eq, %arg1, %c0_i32_8 : i32
    %10 = arith.extui %9 : i1 to i32
    %c0_i32_9 = arith.constant 0 : i32
    %11 = arith.cmpi ne, %10, %c0_i32_9 : i32
    scf.if %11 {
      %c0_10 = arith.constant 0 : index
      %c0_11 = arith.constant 0 : index
      %12 = vector.load %arg11[%c0_10, %c0_11] : memref<4x128xf32, #tpu.memory_space<vmem>>, vector<4x128xf32>
      %c0_12 = arith.constant 0 : index
      %c0_13 = arith.constant 0 : index
      %13 = vector.load %arg3[%c0_12, %c0_13] : memref<4x16xf32, #tpu.memory_space<vmem>>, vector<4x16xf32>
      %c0_14 = arith.constant 0 : index
      %c0_15 = arith.constant 0 : index
      %14 = vector.load %arg5[%c0_14, %c0_15] : memref<16x128xf32, #tpu.memory_space<vmem>>, vector<16x128xf32>
      %cst_16 = arith.constant dense<0.000000e+00> : vector<4x128xf32>
      %15 = tpu.matmul %13, %14, %cst_16 {dimension_numbers = #tpu.dot_dimension_numbers<[1], [0], [0], [1], [0, 0, 1, 1], [], []>} : vector<4x16xf32>, vector<16x128xf32>, vector<4x128xf32> -> vector<4x128xf32>
      %16 = arith.addf %12, %15 : vector<4x128xf32>
      %c0_17 = arith.constant 0 : index
      %c0_18 = arith.constant 0 : index
      %17 = vector.load %arg6[%c0_17, %c0_18] : memref<1x128xf32, #tpu.memory_space<vmem>>, vector<1x128xf32>
      %18 = vector.broadcast %17 : vector<1x128xf32> to vector<4x128xf32>
      %19 = arith.addf %16, %18 : vector<4x128xf32>
      %cst_19 = arith.constant 0.000000e+00 : f32
      %20 = vector.broadcast %cst_19 : f32 to vector<4x128xf32>
      %21 = arith.maximumf %19, %20 : vector<4x128xf32>
      %c0_20 = arith.constant 0 : index
      %c0_21 = arith.constant 0 : index
      %22 = vector.load %arg7[%c0_20, %c0_21] : memref<128x128xf32, #tpu.memory_space<vmem>>, vector<128x128xf32>
      %c0_22 = arith.constant 0 : index
      %c0_23 = arith.constant 0 : index
      %23 = vector.load %arg8[%c0_22, %c0_23] : memref<1x128xf32, #tpu.memory_space<vmem>>, vector<1x128xf32>
      %cst_24 = arith.constant dense<0.000000e+00> : vector<4x128xf32>
      %24 = tpu.matmul %21, %22, %cst_24 {dimension_numbers = #tpu.dot_dimension_numbers<[1], [0], [0], [1], [0, 0, 1, 1], [], []>} : vector<4x128xf32>, vector<128x128xf32>, vector<4x128xf32> -> vector<4x128xf32>
      %25 = vector.broadcast %23 : vector<1x128xf32> to vector<4x128xf32>
      %26 = arith.addf %24, %25 : vector<4x128xf32>
      %cst_25 = arith.constant 0.000000e+00 : f32
      %27 = vector.broadcast %cst_25 : f32 to vector<4x128xf32>
      %28 = arith.maximumf %26, %27 : vector<4x128xf32>
      %c0_26 = arith.constant 0 : index
      %c0_27 = arith.constant 0 : index
      %29 = vector.load %arg9[%c0_26, %c0_27] : memref<128x128xf32, #tpu.memory_space<vmem>>, vector<128x128xf32>
      %cst_28 = arith.constant dense<0.000000e+00> : vector<4x128xf32>
      %30 = tpu.matmul %28, %29, %cst_28 {dimension_numbers = #tpu.dot_dimension_numbers<[1], [0], [0], [1], [0, 0, 1, 1], [], []>} : vector<4x128xf32>, vector<128x128xf32>, vector<4x128xf32> -> vector<4x128xf32>
      %c0_29 = arith.constant 0 : index
      %c0_30 = arith.constant 0 : index
      %31 = vector.load %arg10[%c0_29, %c0_30] : memref<4x128xf32, #tpu.memory_space<vmem>>, vector<4x128xf32>
      tpu.vector_store %arg10[%c0_29, %c0_30], %30 {strides = array<i32>} : memref<4x128xf32, #tpu.memory_space<vmem>>, vector<4x128xf32>,
    } else {
    }
    return
  }
  func.func @transform_0(%arg0: i32, %arg1: i32) -> (i32, i32) {
    %c0_i32 = arith.constant 0 : i32
    return %arg0, %arg1 : i32, i32
  }
  func.func @transform_1(%arg0: i32, %arg1: i32) -> (i32, i32) {
    %c0_i32 = arith.constant 0 : i32
    %c0_i32_0 = arith.constant 0 : i32
    return %arg0, %c0_i32 : i32, i32
  }
  func.func @transform_2(%arg0: i32, %arg1: i32) -> (i32, i32) {
    %c0_i32 = arith.constant 0 : i32
    %c0_i32_0 = arith.constant 0 : i32
    %c0_i32_1 = arith.constant 0 : i32
    return %c0_i32, %c0_i32_0 : i32, i32
  }
  func.func @transform_3(%arg0: i32, %arg1: i32) -> (i32, i32) {
    %c0_i32 = arith.constant 0 : i32
    %c0_i32_0 = arith.constant 0 : i32
    %c0_i32_1 = arith.constant 0 : i32
    return %c0_i32, %c0_i32_0 : i32, i32
  }
  func.func @transform_4(%arg0: i32, %arg1: i32) -> (i32, i32) {
    %c0_i32 = arith.constant 0 : i32
    %c0_i32_0 = arith.constant 0 : i32
    %c0_i32_1 = arith.constant 0 : i32
    return %c0_i32, %c0_i32_0 : i32, i32
  }
  func.func @transform_5(%arg0: i32, %arg1: i32) -> (i32, i32) {
    %c0_i32 = arith.constant 0 : i32
    %c0_i32_0 = arith.constant 0 : i32
    %c0_i32_1 = arith.constant 0 : i32
    return %c0_i32, %c0_i32_0 : i32, i32
  }
  func.func @transform_6(%arg0: i32, %arg1: i32) -> (i32, i32) {
    %c0_i32 = arith.constant 0 : i32
    %c0_i32_0 = arith.constant 0 : i32
    %c0_i32_1 = arith.constant 0 : i32
    return %c0_i32, %c0_i32_0 : i32, i32
  }
  func.func @transform_7(%arg0: i32, %arg1: i32) -> (i32, i32) {
    %c0_i32 = arith.constant 0 : i32
    %c0_i32_0 = arith.constant 0 : i32
    %c0_i32_1 = arith.constant 0 : i32
    return %c0_i32, %c0_i32_0 : i32, i32
  }
  func.func @transform_8(%arg0: i32, %arg1: i32) -> (i32, i32) {
    %c0_i32 = arith.constant 0 : i32
    %c0_i32_0 = arith.constant 0 : i32
    return %arg0, %c0_i32 : i32, i32
  }
}

module attributes {stable_mosaic.version = 11 : i64} {
  func.func @kernel(%arg0: i32, %arg1: i32, %arg2: memref<4x128xf32, #tpu.memory_space<vmem>>, %arg3: memref<4x16xf32, #tpu.memory_space<vmem>>, %arg4: memref<128x128xf32, #tpu.memory_space<vmem>>, %arg5: memref<16x128xf32, #tpu.memory_space<vmem>>, %arg6: memref<1x128xf32, #tpu.memory_space<vmem>>, %arg7: memref<128x128xf32, #tpu.memory_space<vmem>>, %arg8: memref<1x128xf32, #tpu.memory_space<vmem>>, %arg9: memref<128x128xf32, #tpu.memory_space<vmem>>, %arg10: memref<4x128xf32, #tpu.memory_space<vmem>>, %arg11: memref<4x128xf32, #tpu.memory_space<vmem>>) attributes {dimension_semantics = [#tpu.dimension_semantics<parallel>, #tpu.dimension_semantics<arbitrary>], iteration_bounds = array<i64: 1, 1>, scalar_prefetch = 0 : i64, scratch_operands = 1 : i64, tpu.core_type = #tpu.core_type<tc>, window_params = [{transform_indices = @transform_0, window_bounds = array<i64: 4, 128>}, {transform_indices = @transform_1, window_bounds = array<i64: 4, 16>}, {pipeline_mode = #tpu.pipeline_mode<synchronous>, transform_indices = @transform_2, window_bounds = array<i64: 128, 128>}, {pipeline_mode = #tpu.pipeline_mode<synchronous>, transform_indices = @transform_3, window_bounds = array<i64: 16, 128>}, {pipeline_mode = #tpu.pipeline_mode<synchronous>, transform_indices = @transform_4, window_bounds = array<i64: 1, 128>}, {pipeline_mode = #tpu.pipeline_mode<synchronous>, transform_indices = @transform_5, window_bounds = array<i64: 128, 128>}, {pipeline_mode = #tpu.pipeline_mode<synchronous>, transform_indices = @transform_6, window_bounds = array<i64: 1, 128>}, {pipeline_mode = #tpu.pipeline_mode<synchronous>, transform_indices = @transform_7, window_bounds = array<i64: 128, 128>}, {transform_indices = @transform_8, window_bounds = array<i64: 4, 128>}]} {
    %c0_i32 = arith.constant 0 : i32
    %0 = arith.cmpi eq, %arg1, %c0_i32 : i32
    %1 = arith.extui %0 : i1 to i32
    %c0_i32_0 = arith.constant 0 : i32
    %2 = arith.cmpi ne, %1, %c0_i32_0 : i32
    scf.if %2 {
      %cst_10 = arith.constant 0.000000e+00 : f32
      %12 = vector.broadcast %cst_10 : f32 to vector<4x128xf32>
      %c0_11 = arith.constant 0 : index
      %c0_12 = arith.constant 0 : index
      %13 = vector.load %arg11[%c0_11, %c0_12] : memref<4x128xf32, #tpu.memory_space<vmem>>, vector<4x128xf32>
      tpu.vector_store %arg11[%c0_11, %c0_12], %12 {strides = array<i32>} : memref<4x128xf32, #tpu.memory_space<vmem>>, vector<4x128xf32>,
    } else {
    }
    %c0 = arith.constant 0 : index
    %c0_1 = arith.constant 0 : index
    %3 = vector.load %arg11[%c0, %c0_1] : memref<4x128xf32, #tpu.memory_space<vmem>>, vector<4x128xf32>
    %c0_2 = arith.constant 0 : index
    %c0_3 = arith.constant 0 : index
    %4 = vector.load %arg2[%c0_2, %c0_3] : memref<4x128xf32, #tpu.memory_space<vmem>>, vector<4x128xf32>
    %c0_4 = arith.constant 0 : index
    %c0_5 = arith.constant 0 : index
    %5 = vector.load %arg4[%c0_4, %c0_5] : memref<128x128xf32, #tpu.memory_space<vmem>>, vector<128x128xf32>
    %cst = arith.constant dense<0.000000e+00> : vector<4x128xf32>
    %6 = tpu.matmul %4, %5, %cst {dimension_numbers = #tpu.dot_dimension_numbers<[1], [0], [0], [1], [0, 0, 1, 1], [], []>} : vector<4x128xf32>, vector<128x128xf32>, vector<4x128xf32> -> vector<4x128xf32>
    %7 = arith.addf %3, %6 : vector<4x128xf32>
    %c0_6 = arith.constant 0 : index
    %c0_7 = arith.constant 0 : index
    %8 = vector.load %arg11[%c0_6, %c0_7] : memref<4x128xf32, #tpu.memory_space<vmem>>, vector<4x128xf32>
    tpu.vector_store %arg11[%c0_6, %c0_7], %7 {strides = array<i32>} : memref<4x128xf32, #tpu.memory_space<vmem>>, vector<4x128xf32>,
    %c0_i32_8 = arith.constant 0 : i32
    %9 = arith.cmpi eq, %arg1, %c0_i32_8 : i32
    %10 = arith.extui %9 : i1 to i32
    %c0_i32_9 = arith.constant 0 : i32
    %11 = arith.cmpi ne, %10, %c0_i32_9 : i32
    scf.if %11 {
      %c0_10 = arith.constant 0 : index
      %c0_11 = arith.constant 0 : index
      %12 = vector.load %arg11[%c0_10, %c0_11] : memref<4x128xf32, #tpu.memory_space<vmem>>, vector<4x128xf32>
      %c0_12 = arith.constant 0 : index
      %c0_13 = arith.constant 0 : index
      %13 = vector.load %arg3[%c0_12, %c0_13] : memref<4x16xf32, #tpu.memory_space<vmem>>, vector<4x16xf32>
      %c0_14 = arith.constant 0 : index
      %c0_15 = arith.constant 0 : index
      %14 = vector.load %arg5[%c0_14, %c0_15] : memref<16x128xf32, #tpu.memory_space<vmem>>, vector<16x128xf32>
      %cst_16 = arith.constant dense<0.000000e+00> : vector<4x128xf32>
      %15 = tpu.matmul %13, %14, %cst_16 {dimension_numbers = #tpu.dot_dimension_numbers<[1], [0], [0], [1], [0, 0, 1, 1], [], []>} : vector<4x16xf32>, vector<16x128xf32>, vector<4x128xf32> -> vector<4x128xf32>
      %16 = arith.addf %12, %15 : vector<4x128xf32>
      %c0_17 = arith.constant 0 : index
      %c0_18 = arith.constant 0 : index
      %17 = vector.load %arg6[%c0_17, %c0_18] : memref<1x128xf32, #tpu.memory_space<vmem>>, vector<1x128xf32>
      %18 = vector.broadcast %17 : vector<1x128xf32> to vector<4x128xf32>
      %19 = arith.addf %16, %18 : vector<4x128xf32>
      %cst_19 = arith.constant 0.000000e+00 : f32
      %20 = vector.broadcast %cst_19 : f32 to vector<4x128xf32>
      %21 = arith.maximumf %19, %20 : vector<4x128xf32>
      %c0_20 = arith.constant 0 : index
      %c0_21 = arith.constant 0 : index
      %22 = vector.load %arg7[%c0_20, %c0_21] : memref<128x128xf32, #tpu.memory_space<vmem>>, vector<128x128xf32>
      %c0_22 = arith.constant 0 : index
      %c0_23 = arith.constant 0 : index
      %23 = vector.load %arg8[%c0_22, %c0_23] : memref<1x128xf32, #tpu.memory_space<vmem>>, vector<1x128xf32>
      %cst_24 = arith.constant dense<0.000000e+00> : vector<4x128xf32>
      %24 = tpu.matmul %21, %22, %cst_24 {dimension_numbers = #tpu.dot_dimension_numbers<[1], [0], [0], [1], [0, 0, 1, 1], [], []>} : vector<4x128xf32>, vector<128x128xf32>, vector<4x128xf32> -> vector<4x128xf32>
      %25 = vector.broadcast %23 : vector<1x128xf32> to vector<4x128xf32>
      %26 = arith.addf %24, %25 : vector<4x128xf32>
      %cst_25 = arith.constant 0.000000e+00 : f32
      %27 = vector.broadcast %cst_25 : f32 to vector<4x128xf32>
      %28 = arith.maximumf %26, %27 : vector<4x128xf32>
      %c0_26 = arith.constant 0 : index
      %c0_27 = arith.constant 0 : index
      %29 = vector.load %arg9[%c0_26, %c0_27] : memref<128x128xf32, #tpu.memory_space<vmem>>, vector<128x128xf32>
      %cst_28 = arith.constant dense<0.000000e+00> : vector<4x128xf32>
      %30 = tpu.matmul %28, %29, %cst_28 {dimension_numbers = #tpu.dot_dimension_numbers<[1], [0], [0], [1], [0, 0, 1, 1], [], []>} : vector<4x128xf32>, vector<128x128xf32>, vector<4x128xf32> -> vector<4x128xf32>
      %c0_29 = arith.constant 0 : index
      %c0_30 = arith.constant 0 : index
      %31 = vector.load %arg10[%c0_29, %c0_30] : memref<4x128xf32, #tpu.memory_space<vmem>>, vector<4x128xf32>
      tpu.vector_store %arg10[%c0_29, %c0_30], %30 {strides = array<i32>} : memref<4x128xf32, #tpu.memory_space<vmem>>, vector<4x128xf32>,
    } else {
    }
    return
  }
  func.func @transform_0(%arg0: i32, %arg1: i32) -> (i32, i32) {
    %c0_i32 = arith.constant 0 : i32
    return %arg0, %arg1 : i32, i32
  }
  func.func @transform_1(%arg0: i32, %arg1: i32) -> (i32, i32) {
    %c0_i32 = arith.constant 0 : i32
    %c0_i32_0 = arith.constant 0 : i32
    return %arg0, %c0_i32 : i32, i32
  }
  func.func @transform_2(%arg0: i32, %arg1: i32) -> (i32, i32) {
    %c0_i32 = arith.constant 0 : i32
    %c0_i32_0 = arith.constant 0 : i32
    %c0_i32_1 = arith.constant 0 : i32
    return %c0_i32, %c0_i32_0 : i32, i32
  }
  func.func @transform_3(%arg0: i32, %arg1: i32) -> (i32, i32) {
    %c0_i32 = arith.constant 0 : i32
    %c0_i32_0 = arith.constant 0 : i32
    %c0_i32_1 = arith.constant 0 : i32
    return %c0_i32, %c0_i32_0 : i32, i32
  }
  func.func @transform_4(%arg0: i32, %arg1: i32) -> (i32, i32) {
    %c0_i32 = arith.constant 0 : i32
    %c0_i32_0 = arith.constant 0 : i32
    %c0_i32_1 = arith.constant 0 : i32
    return %c0_i32, %c0_i32_0 : i32, i32
  }
  func.func @transform_5(%arg0: i32, %arg1: i32) -> (i32, i32) {
    %c0_i32 = arith.constant 0 : i32
    %c0_i32_0 = arith.constant 0 : i32
    %c0_i32_1 = arith.constant 0 : i32
    return %c0_i32, %c0_i32_0 : i32, i32
  }
  func.func @transform_6(%arg0: i32, %arg1: i32) -> (i32, i32) {
    %c0_i32 = arith.constant 0 : i32
    %c0_i32_0 = arith.constant 0 : i32
    %c0_i32_1 = arith.constant 0 : i32
    return %c0_i32, %c0_i32_0 : i32, i32
  }
  func.func @transform_7(%arg0: i32, %arg1: i32) -> (i32, i32) {
    %c0_i32 = arith.constant 0 : i32
    %c0_i32_0 = arith.constant 0 : i32
    %c0_i32_1 = arith.constant 0 : i32
    return %c0_i32, %c0_i32_0 : i32, i32
  }
  func.func @transform_8(%arg0: i32, %arg1: i32) -> (i32, i32) {
    %c0_i32 = arith.constant 0 : i32
    %c0_i32_0 = arith.constant 0 : i32
    return %arg0, %c0_i32 : i32, i32
  }
}

</mosaic_0001>

<bundles_post_ra>
// kernel: tpu_custom_call.1
= control target key start
LH: loop header
LB: loop body
LE: loop exit
PB: predicated region body
PF: predicated region fallthrough
CT: control target
= control target key end

     0   :  { %13 = vsyncpa [#allocation4], 0  ;;  %s1106_s0 = inlined_call_operand.hbm [shape: f32[4,128], index: 0, kind: input, shape index: {}]   ;;  %s1107_s1 = inlined_call_operand.hbm [shape: f32[4,16], index: 1, kind: input, shape index: {}]   ;;  %s1108_s2 = inlined_call_operand.hbm [shape: f32[128,128], index: 2, kind: input, shape index: {}]   ;;  %s1109_s3 = inlined_call_operand.hbm [shape: f32[16,128], index: 3, kind: input, shape index: {}]   ;;  %s1110_s4 = inlined_call_operand.vmem [shape: f32[1,128], index: 4, kind: input, shape index: {}]   ;;  %s1111_s5 = inlined_call_operand.hbm [shape: f32[128,128], index: 5, kind: input, shape index: {}]   ;;  %s1112_s6 = inlined_call_operand.vmem [shape: f32[1,128], index: 6, kind: input, shape index: {}]   ;;  %s1113_s7 = inlined_call_operand.hbm [shape: f32[128,128], index: 7, kind: input, shape index: {}]   ;;  %s1114_s8 = inlined_call_operand.hbm [shape: f32[4,128], index: 8, kind: output, shape index: {}]  }
   0x1   :  { %14 = vsyncpa [#allocation7], 0 }
   0x2   :  { %15 = vsyncpa [#allocation10], 0 }
   0x3   :  { %16 = vsyncpa [#allocation13], 0 }
   0x4   :  { %17 = vsyncpa [#allocation5], 0  ;;  %s913_s27 = smov [#allocation6]   ;;  %s749_s9 = scalar_lea.hbm %s1107_s1, 64 }
   0x5   :  { %s34_s28 = sshll.u32 %s913_s27, 4  ;;  %p750_p0 = scmp.ne.s32.totalorder %s1107_s1, %s749_s9  ;;  %s35_s28 = int_to_ptr.vmem [resolvable:$true] %s34_s28 }
   0x6   :  { %p753_p1 = scmp.lt.u32.totalorder %s749_s9, %s1107_s1 }
   0x8   :  { %p755_p2 = pnand %p753_p1, %p750_p0 }
   0xa   :  { %758 = shalt.err (!%p755_p2)
}
   0xb   :  { %s759_s14 = scalar_lea.vmem %s35_s28, 64  ;;  %p764_p4 = scmp.lt.s32.totalorder %s35_s28, %s35_s28 }
   0xc   :  { %p760_p3 = scmp.ne.s32.totalorder %s35_s28, %s759_s14  ;;  %p765_p5 = scmp.lt.s32.totalorder %s759_s14, %s759_s14 }
   0xe   :  { %p766_p6 = por %p765_p5, %p764_p4 }
  0x10   :  { %p767_p7 = pnand %p766_p6, %p760_p3 }
  0x12   :  { %770 = shalt.err (!%p767_p7)
}
  0x13   :  { %37 = dma.hbm_to_vmem [thread:$0]  %s1107_s1, 64, %s35_s28, [#allocation7]  }
  0x14   :  { %s914_s17 = smov [#allocation9]   ;;  %s915_s19 = smov [#allocation3]  }
  0x15   :  { %s55_s18 = sshll.u32 %s914_s17, 4  ;;  %s24_s20 = sshll.u32 %s915_s19, 4  ;;  %s56_s18 = int_to_ptr.vmem [resolvable:$true] %s55_s18  ;;  %s25_s20 = int_to_ptr.vmem [resolvable:$true] %s24_s20 }
  0x16   :  { %s771_s23 = scalar_lea.hbm %s1109_s3, 256 }
  0x17   :  { %p772_p8 = scmp.ne.s32.totalorder %s1109_s3, %s771_s23  ;;  %p775_p9 = scmp.lt.u32.totalorder %s771_s23, %s1109_s3 }
  0x19   :  { %p777_p10 = pnand %p775_p9, %p772_p8 }
  0x1b   :  { %780 = shalt.err (!%p777_p10)
}
  0x1c   :  { %s781_s1 = scalar_lea.vmem %s56_s18, 256  ;;  %p786_p12 = scmp.lt.s32.totalorder %s56_s18, %s56_s18 }
  0x1d   :  { %p782_p11 = scmp.ne.s32.totalorder %s56_s18, %s781_s1  ;;  %p787_p13 = scmp.lt.s32.totalorder %s781_s1, %s781_s1 }
  0x1f   :  { %p788_p0 = por %p787_p13, %p786_p12 }
  0x21   :  { %p789_p1 = pnand %p788_p0, %p782_p11 }
  0x23   :  { %792 = shalt.err (!%p789_p1)
}
  0x24   :  { %s916_s28 = smov 128   ;;  %s917_s29 = smov 8  }
  0x25   :  { %61 = dma.hbm_to_vmem [thread:$0]  %s1109_s3, 256, %s56_s18, [#allocation10], %s916_s28, %s916_s28, %s917_s29  }
  0x26   :  { %s793_s12 = scalar_lea.hbm %s1106_s0, 64 }
  0x27   :  { %p794_p2 = scmp.ne.s32.totalorder %s1106_s0, %s793_s12  ;;  %p797_p3 = scmp.lt.u32.totalorder %s793_s12, %s1106_s0 }
  0x29   :  { %p799_p4 = pnand %p797_p3, %p794_p2 }
  0x2b   :  { %802 = shalt.err (!%p799_p4)
}
  0x2c   :  { %s803_s17 = scalar_lea.vmem %s25_s20, 64  ;;  %p808_p6 = scmp.lt.s32.totalorder %s25_s20, %s25_s20 }
  0x2d   :  { %p804_p5 = scmp.ne.s32.totalorder %s25_s20, %s803_s17  ;;  %p809_p7 = scmp.lt.s32.totalorder %s803_s17, %s803_s17 }
  0x2f   :  { %p810_p8 = por %p809_p7, %p808_p6 }
  0x31   :  { %p811_p9 = pnand %p810_p8, %p804_p5 }
  0x33   :  { %814 = shalt.err (!%p811_p9)
}
  0x34   :  { %27 = dma.hbm_to_vmem [thread:$0]  %s1106_s0, 64, %s25_s20, [#allocation4]  }
  0x35   :  { %s918_s19 = smov [#allocation8]   ;;  %s919_s22 = smov [#allocation11]  }
  0x36   :  { %s43_s21 = sshll.u32 %s918_s19, 4  ;;  %s69_s23 = sshll.u32 %s919_s22, 4  ;;  %s44_s21 = int_to_ptr.vmem [resolvable:$true] %s43_s21  ;;  %s70_s23 = int_to_ptr.vmem [resolvable:$true] %s69_s23 }
  0x37   :  { %s815_s26 = scalar_lea.hbm %s1108_s2, 2048 }
  0x38   :  { %p816_p10 = scmp.ne.s32.totalorder %s1108_s2, %s815_s26  ;;  %p819_p11 = scmp.lt.u32.totalorder %s815_s26, %s1108_s2 }
  0x3a   :  { %p821_p12 = pnand %p819_p11, %p816_p10 }
  0x3c   :  { %824 = shalt.err (!%p821_p12)
}
  0x3d   :  { %s825_s0 = scalar_lea.vmem %s44_s21, 2048  ;;  %p830_p0 = scmp.lt.s32.totalorder %s44_s21, %s44_s21 }
  0x3e   :  { %p826_p13 = scmp.ne.s32.totalorder %s44_s21, %s825_s0  ;;  %p831_p1 = scmp.lt.s32.totalorder %s825_s0, %s825_s0 }
  0x40   :  { %p832_p2 = por %p831_p1, %p830_p0 }
  0x42   :  { %p833_p3 = pnand %p832_p2, %p826_p13 }
  0x44   :  { %836 = shalt.err (!%p833_p3)
}
  0x45   :  { %49 = dma.hbm_to_vmem [thread:$0]  %s1108_s2, 2048, %s44_s21, [#allocation7], %s916_s28, %s916_s28, %s917_s29  }
  0x46   :  { %s837_s13 = scalar_lea.hbm %s1111_s5, 2048 }
  0x47   :  { %p838_p4 = scmp.ne.s32.totalorder %s1111_s5, %s837_s13  ;;  %p841_p5 = scmp.lt.u32.totalorder %s837_s13, %s1111_s5 }
  0x49   :  { %p843_p6 = pnand %p841_p5, %p838_p4 }
  0x4b   :  { %846 = shalt.err (!%p843_p6)
}
  0x4c   :  { %s847_s3 = scalar_lea.vmem %s70_s23, 2048  ;;  %p852_p8 = scmp.lt.s32.totalorder %s70_s23, %s70_s23 }
  0x4d   :  { %p848_p7 = scmp.ne.s32.totalorder %s70_s23, %s847_s3  ;;  %p853_p9 = scmp.lt.s32.totalorder %s847_s3, %s847_s3 }
  0x4f   :  { %p854_p10 = por %p853_p9, %p852_p8 }
  0x51   :  { %p855_p11 = pnand %p854_p10, %p848_p7 }
  0x53   :  { %858 = shalt.err (!%p855_p11)
}
  0x54   :  { %75 = dma.hbm_to_vmem [thread:$0]  %s1111_s5, 2048, %s70_s23, [#allocation10], %s916_s28, %s916_s28, %s917_s29  }
  0x55   :  { %s920_s19 = smov [#allocation12]   ;;  %s859_s25 = scalar_lea.hbm %s1113_s7, 2048 }
  0x56   :  { %s83_s21 = sshll.u32 %s920_s19, 4  ;;  %p860_p12 = scmp.ne.s32.totalorder %s1113_s7, %s859_s25  ;;  %s84_s21 = int_to_ptr.vmem [resolvable:$true] %s83_s21 }
  0x57   :  { %p863_p13 = scmp.lt.u32.totalorder %s859_s25, %s1113_s7 }
  0x59   :  { %p865_p0 = pnand %p863_p13, %p860_p12 }
  0x5b   :  { %868 = shalt.err (!%p865_p0)
}
  0x5c   :  { %s869_s9 = scalar_lea.vmem %s84_s21, 2048  ;;  %p874_p2 = scmp.lt.s32.totalorder %s84_s21, %s84_s21 }
  0x5d   :  { %p870_p1 = scmp.ne.s32.totalorder %s84_s21, %s869_s9  ;;  %p875_p3 = scmp.lt.s32.totalorder %s869_s9, %s869_s9 }
  0x5f   :  { %p876_p4 = por %p875_p3, %p874_p2 }
  0x61   :  { %p877_p5 = pnand %p876_p4, %p870_p1 }
  0x63   :  { %880 = shalt.err (!%p877_p5)
}
  0x64   :  { %89 = dma.hbm_to_vmem [thread:$0]  %s1113_s7, 2048, %s84_s21, [#allocation13], %s916_s28, %s916_s28, %s917_s29  }
  0x65   :  { %903 = dma.done.wait [#allocation4], 64  }
  0x66   :  { %904 = vsyncadd [#allocation4], 4294967232 }
  0x67   :  { %905 = dma.done.wait [#allocation7], 2112  }
  0x68   :  { %906 = vsyncadd [#allocation7], 4294965184 }
  0x69   :  { %907 = dma.done.wait [#allocation10], 2304  }
  0x6a   :  { %908 = vsyncadd [#allocation10], 4294964992 }
  0x6b   :  { %909 = dma.done.wait [#allocation13], 2048  }
  0x6c   :  { %910 = vsyncadd [#allocation13], 4294965248  ;;  %v921_v0 = vmov 0.0|0.0   ;;  %vm922_vm0 = vmmov 0   ;;  %v923_v1 = vmov 0.0   ;;  %v115_v2 = vld [vmem:[#allocation8] sm:$0xff] }
  0x6d   :  { %662 = vmatprep.subr.bf16.mxu0 %v921_v0  ;;  %582 = vmatprep.mubr.msk.f32.mxu0 %vm922_vm0, %v923_v1  ;;  %112 = vst [vmem:[#allocation2] sm:$0xf] %v923_v1  ;;  %v116_v3 = vld [vmem:[#allocation8 + $0x8] sm:$0xff]  ;;  %v117_v4 = vld [vmem:[#allocation8 + $0x10] sm:$0xff]  ;;  %v118_v6 = vld [vmem:[#allocation8 + $0x18] sm:$0xff]  ;;  %vm210_vm1 = vcmask 130048  }
  0x6e   :  { %686 = vmatprep.subr.bf16.mxu1 %v921_v0  ;;  %589 = vmatprep.mubr.msk.f32.mxu1 %vm922_vm0, %v923_v1  ;;  %v663_v5 = vpack.c.bf16 %v116_v3, %v115_v2  ;;  %v666_v7 = vpack.c.bf16 %v118_v6, %v117_v4  ;;  %v119_v8 = vld [vmem:[#allocation8 + $0x20] sm:$0xff]  ;;  %v120_v9 = vld [vmem:[#allocation8 + $0x28] sm:$0xff]  ;;  %v294_v12 = vld [vmem:[#allocation11] sm:$0xff]  ;;  %s924_s20 = smov [#allocation14]  }
  0x6f   :  { %v208_v10 = vld [vmem:[#allocation9] sm:$0xff]  ;;  %v209_v11 = vld [vmem:[#allocation9 + $0x8] sm:$0xff]  ;;  %v669_v13 = vpack.c.bf16 %v120_v9, %v119_v8  ;;  %v295_v15 = vld [vmem:[#allocation11 + $0x8] sm:$0xff]  ;;  %s481_s10 = sshll.u32 %s924_s20, 4  ;;  %s482_s10 = int_to_ptr.vmem [resolvable:$true] %s481_s10 }
  0x70   :  { %664 = vmatpush3.bf16.msra.mxu0 %v663_v5  ;;  %v687_v14 = vpack.c.bf16 %v209_v11, %v208_v10  ;;  %v121_v16 = vld [vmem:[#allocation8 + $0x30] sm:$0xff]  ;;  %v122_v17 = vld [vmem:[#allocation8 + $0x38] sm:$0xff]  ;;  %v690_v19 = vpack.c.bf16 %v295_v15, %v294_v12  ;;  %v296_v20 = vld [vmem:[#allocation11 + $0x10] sm:$0xff]  ;;  %p886_p7 = scmp.lt.s32.totalorder %s482_s10, %s482_s10 }
  0x71   :  { %665 = vmatprep.subr.bf16.mxu0 %v921_v0  ;;  %v207_v18 = vld [vmem:[#allocation6] sm:$0xf]  ;;  %v297_v21 = vld [vmem:[#allocation11 + $0x18] sm:$0xff]  ;;  %v672_v22 = vpack.c.bf16 %v122_v17, %v121_v16  ;;  %v123_v23 = vld [vmem:[#allocation8 + $0x40] sm:$0xff] }
  0x72   :  { %688 = vmatpush3.bf16.msra.mxu1 %v687_v14  ;;  %v124_v24 = vld [vmem:[#allocation8 + $0x48] sm:$0xff]  ;;  %v693_v25 = vpack.c.bf16 %v297_v21, %v296_v20  ;;  %v298_v26 = vld [vmem:[#allocation11 + $0x20] sm:$0xff]  ;;  %v299_v27 = vld [vmem:[#allocation11 + $0x28] sm:$0xff] }
  0x73   :  { %689 = vmatprep.subr.bf16.mxu1 %v921_v0  ;;  %v675_v28 = vpack.c.bf16 %v124_v24, %v123_v23  ;;  %v125_v29 = vld [vmem:[#allocation8 + $0x50] sm:$0xff]  ;;  %v126_v30 = vld [vmem:[#allocation8 + $0x58] sm:$0xff]  ;;  %v696_v31 = vpack.c.bf16 %v299_v27, %v298_v26  ;;  %v300_v32 = vld [vmem:[#allocation11 + $0x30] sm:$0xff] }
  0x74   :  { %667 = vmatpush3.bf16.msra.mxu0 %v666_v7  ;;  %v301_v33 = vld [vmem:[#allocation11 + $0x38] sm:$0xff]  ;;  %v678_v34 = vpack.c.bf16 %v126_v30, %v125_v29  ;;  %v127_v35 = vld [vmem:[#allocation8 + $0x60] sm:$0xff]  ;;  %v129_v39 = vld [vmem:[#allocation8 + $0x70] sm:$0xff] }
  0x75   :  { %668 = vmatprep.subr.bf16.mxu0 %v921_v0  ;;  %590 = vmatmul.mubr.msk.f32.vlgmr.msra.gmra.mrb[0].mxu1 %vm210_vm1, %v207_v18  ;;  %v128_v36 = vld [vmem:[#allocation8 + $0x68] sm:$0xff]  ;;  %v699_v37 = vpack.c.bf16 %v301_v33, %v300_v32  ;;  %v130_v40 = vld [vmem:[#allocation8 + $0x78] sm:$0xff]  ;;  %v302_v43 = vld [vmem:[#allocation11 + $0x40] sm:$0xff] }
  0x76   :  { %691 = vmatpush3.bf16.msra.mxu1 %v690_v19  ;;  %624 = vmatprep.mubr.msk.f32.mxu1 %vm922_vm0, %v923_v1  ;;  %v681_v38 = vpack.c.bf16 %v128_v36, %v127_v35  ;;  %v684_v41 = vpack.c.bf16 %v130_v40, %v129_v39  ;;  %v114_v42 = vld [vmem:[#allocation3] sm:$0xf]  ;;  %v304_v46 = vld [vmem:[#allocation11 + $0x50] sm:$0xff]  ;;  %v305_v47 = vld [vmem:[#allocation11 + $0x58] sm:$0xff] }
  0x77   :  { %692 = vmatprep.subr.bf16.mxu1 %v921_v0  ;;  %v303_v44 = vld [vmem:[#allocation11 + $0x48] sm:$0xff]  ;;  %v705_v48 = vpack.c.bf16 %v305_v47, %v304_v46  ;;  %v306_v49 = vld [vmem:[#allocation11 + $0x60] sm:$0xff]  ;;  %v308_v52 = vld [vmem:[#allocation11 + $0x70] sm:$0xff] }
  0x78   :  { %670 = vmatpush3.bf16.msra.mxu0 %v669_v13  ;;  %v702_v45 = vpack.c.bf16 %v303_v44, %v302_v43  ;;  %v307_v50 = vld [vmem:[#allocation11 + $0x68] sm:$0xff]  ;;  %v309_v53 = vld [vmem:[#allocation11 + $0x78] sm:$0xff]  ;;  %v388_v55 = vld [vmem:[#allocation12] sm:$0xff] }
  0x79   :  { %671 = vmatprep.subr.bf16.mxu0 %v921_v0  ;;  %v708_v51 = vpack.c.bf16 %v307_v50, %v306_v49  ;;  %v711_v54 = vpack.c.bf16 %v309_v53, %v308_v52  ;;  %v389_v56 = vld [vmem:[#allocation12 + $0x8] sm:$0xff]  ;;  %v390_v57 = vld [vmem:[#allocation12 + $0x10] sm:$0xff]  ;;  %v391_v59 = vld [vmem:[#allocation12 + $0x18] sm:$0xff] }
  0x7a   :  { %694 = vmatpush3.bf16.msra.mxu1 %v693_v25  ;;  %v714_v58 = vpack.c.bf16 %v389_v56, %v388_v55  ;;  %v717_v60 = vpack.c.bf16 %v391_v59, %v390_v57  ;;  %v392_v61 = vld [vmem:[#allocation12 + $0x20] sm:$0xff]  ;;  %v393_v62 = vld [vmem:[#allocation12 + $0x28] sm:$0xff]  ;;  %v395_v2 = vld [vmem:[#allocation12 + $0x38] sm:$0xff] }
  0x7b   :  { %695 = vmatprep.subr.bf16.mxu1 %v921_v0  ;;  %v720_v63 = vpack.c.bf16 %v393_v62, %v392_v61  ;;  %v396_v4 = vld [vmem:[#allocation12 + $0x40] sm:$0xff]  ;;  %v397_v5 = vld [vmem:[#allocation12 + $0x48] sm:$0xff]  ;;  %v398_v7 = vld [vmem:[#allocation12 + $0x50] sm:$0xff] }
  0x7c   :  { %673 = vmatpush3.bf16.msra.mxu0 %v672_v22  ;;  %v726_v6 = vpack.c.bf16 %v397_v5, %v396_v4  ;;  %v399_v8 = vld [vmem:[#allocation12 + $0x58] sm:$0xff]  ;;  %v400_v10 = vld [vmem:[#allocation12 + $0x60] sm:$0xff]  ;;  %v401_v11 = vld [vmem:[#allocation12 + $0x68] sm:$0xff] }
  0x7d   :  { %674 = vmatprep.subr.bf16.mxu0 %v921_v0  ;;  %v729_v9 = vpack.c.bf16 %v399_v8, %v398_v7  ;;  %v732_v12 = vpack.c.bf16 %v401_v11, %v400_v10  ;;  %v113_v15 = vld [vmem:[#allocation2] sm:$0xf]  ;;  %v402_v24 = vld [vmem:[#allocation12 + $0x70] sm:$0xff]  ;;  %v403_v25 = vld [vmem:[#allocation12 + $0x78] sm:$0xff] }
  0x7e   :  { %697 = vmatpush3.bf16.msra.mxu1 %v696_v31  ;;  %v494_v20 = vld [vmem:[%s1110_s4] ss:$0 sm:$0xff]  ;;  %v735_v26 = vpack.c.bf16 %v403_v25, %v402_v24  ;;  %s881_s4 = scalar_lea.vmem %s482_s10, 64 }
  0x7f   :  { %698 = vmatprep.subr.bf16.mxu1 %v921_v0  ;;  %p882_p6 = scmp.ne.s32.totalorder %s482_s10, %s881_s4  ;;  %p887_p8 = scmp.lt.s32.totalorder %s881_s4, %s881_s4 }
  0x80   :  { %676 = vmatpush3.bf16.msra.mxu0 %v675_v28 }
  0x81   :  { %677 = vmatprep.subr.bf16.mxu0 %v921_v0  ;;  %p888_p9 = por %p887_p8, %p886_p7 }
  0x82   :  { %700 = vmatpush3.bf16.msra.mxu1 %v699_v37 }
  0x83   :  { %701 = vmatprep.subr.bf16.mxu1 %v921_v0  ;;  %p889_p10 = pnand %p888_p9, %p882_p6 }
  0x84   :  { %679 = vmatpush3.bf16.msra.mxu0 %v678_v34 }
  0x85   :  { %680 = vmatprep.subr.bf16.mxu0 %v921_v0 }
  0x86   :  { %703 = vmatpush3.bf16.msra.mxu1 %v702_v45 }
  0x87   :  { %704 = vmatprep.subr.bf16.mxu1 %v921_v0 }
  0x88   :  { %682 = vmatpush3.bf16.msra.mxu0 %v681_v38 }
  0x89   :  { %683 = vmatprep.subr.bf16.mxu0 %v921_v0 }
  0x8a   :  { %706 = vmatpush3.bf16.msra.mxu1 %v705_v48 }
  0x8b   :  { %707 = vmatprep.subr.bf16.mxu1 %v921_v0 }
  0x8c   :  { %685 = vmatpush3.bf16.msra.mxu0 %v684_v41 }
  0x8d   :  { %713 = vmatprep.subr.bf16.mxu0 %v921_v0 }
  0x8e   :  { %709 = vmatpush3.bf16.msra.mxu1 %v708_v51 }
  0x8f   :  { %583 = vmatmul.mubr.f32.vlgmr.msra.gmra.mrb[0].mxu0 %v114_v42  ;;  %710 = vmatprep.subr.bf16.mxu1 %v921_v0 }
  0x90   :  { %659 = vmatprep.mubr.msk.f32.mxu0 %vm922_vm0, %v923_v1  ;;  %715 = vmatpush3.bf16.msra.mxu0 %v714_v58  ;;  %v394_v1 = vld [vmem:[#allocation12 + $0x30] sm:$0xff] }
  0x91   :  { %716 = vmatprep.subr.bf16.mxu0 %v921_v0  ;;  %v723_v3 = vpack.c.bf16 %v395_v2, %v394_v1 }
  0x92   :  { %712 = vmatpush3.bf16.msra.mxu1 %v711_v54 }
  0x94   :  { %718 = vmatpush3.bf16.msra.mxu0 %v717_v60 }
  0x95   :  { %719 = vmatprep.subr.bf16.mxu0 %v921_v0 }
  0x98   :  { %721 = vmatpush3.bf16.msra.mxu0 %v720_v63 }
  0x99   :  { %722 = vmatprep.subr.bf16.mxu0 %v921_v0 }
  0x9c   :  { %724 = vmatpush3.bf16.msra.mxu0 %v723_v3 }
  0x9d   :  { %725 = vmatprep.subr.bf16.mxu0 %v921_v0 }
  0xa0   :  { %727 = vmatpush3.bf16.msra.mxu0 %v726_v6 }
  0xa1   :  { %728 = vmatprep.subr.bf16.mxu0 %v921_v0 }
  0xa4   :  { %730 = vmatpush3.bf16.msra.mxu0 %v729_v9 }
  0xa5   :  { %731 = vmatprep.subr.bf16.mxu0 %v921_v0 }
  0xa8   :  { %733 = vmatpush3.bf16.msra.mxu0 %v732_v12 }
  0xa9   :  { %734 = vmatprep.subr.bf16.mxu0 %v921_v0  ;;  %v495_v0 = vld [vmem:[%s1112_s6] ss:$0 sm:$0xff] }
  0xac   :  { %736 = vmatpush3.bf16.msra.mxu0 %v735_v26 }
 0x148   :  { %v280_v13 = vpop.f32.mrb[0].mxu1 }
 0x149   :  { %v591_v14 = vpop.f32.mrb[1].mxu1 }
 0x162   :  { %v197_v16 = vpop.f32.mrb[0].mxu0 }
 0x163   :  { %v201_v17 = vadd.f32 %v197_v16, %v113_v15  ;;  %v584_v18 = vpop.f32.mrb[1].mxu0 }
 0x165   :  { %202 = vst [vmem:[#allocation2] sm:$0xf] %v201_v17 }
 0x16c   :  { %v206_v19 = vld [vmem:[#allocation2] sm:$0xf] }
 0x16d   :  { %v284_v21 = vadd.f32 %v280_v13, %v206_v19 }
 0x16f   :  { %v292_v22 = vadd.f32 %v494_v20, %v284_v21 }
 0x171   :  { %v293_v23 = vmax.f32 %v292_v22, 0.0 }
 0x173   :  { %625 = vmatmul.mubr.f32.vlgmr.msra.gmra.mrb[2].mxu1 %v293_v23 }
 0x246   :  { %v383_v27 = vpop.f32.mrb[2].mxu1 }
 0x247   :  { %v384_v28 = vadd.f32 %v495_v0, %v383_v27  ;;  %v626_v29 = vpop.f32.mrb[3].mxu1 }
 0x249   :  { %v387_v30 = vmax.f32 %v384_v28, 0.0 }
 0x24b   :  { %660 = vmatmul.mubr.f32.vlgmr.msra.gmra.mrb[2].mxu0 %v387_v30 }
 0x31e   :  { %v470_v31 = vpop.f32.mrb[2].mxu0 }
 0x31f   :  { %474 = vst [vmem:[#allocation14] sm:$0xf] %v470_v31  ;;  %v661_v32 = vpop.f32.mrb[3].mxu0 }
 0x320   :  { %892 = shalt.err (!%p889_p10)
}
 0x321   :  { %s893_s12 = scalar_lea.hbm %s1114_s8, 64 }
 0x322   :  { %p894_p11 = scmp.ne.s32.totalorder %s1114_s8, %s893_s12  ;;  %p897_p12 = scmp.lt.u32.totalorder %s893_s12, %s1114_s8 }
 0x324   :  { %p899_p13 = pnand %p897_p12, %p894_p11 }
 0x326   :  { %902 = shalt.err (!%p899_p13)
}
 0x327   :  { %484 = dma.vmem_to_hbm [thread:$0]  %s482_s10, 64, %s1114_s8, [#allocation5]  }
 0x328   :  { %911 = dma.done.wait [#allocation5], 64  }
 0x329   :  { %912 = vsyncadd [#allocation5], 4294967232 }
 0x32a   :  { %488 = vsyncpa [#allocation4], 1 }
 0x32b   :  { %489 = vsyncpa [#allocation7], 1 }
 0x32c   :  { %490 = vsyncpa [#allocation10], 1 }
 0x32d   :  { %491 = vsyncpa [#allocation13], 1 }
 0x32e   :  { %492 = vsyncpa [#allocation5], 1 }

// kernel: tpu_custom_call.1
= control target key start
LH: loop header
LB: loop body
LE: loop exit
PB: predicated region body
PF: predicated region fallthrough
CT: control target
= control target key end

     0   :  { %13 = vsyncpa [#allocation4], 0  ;;  %s1106_s0 = inlined_call_operand.hbm [shape: f32[4,128], index: 0, kind: input, shape index: {}]   ;;  %s1107_s1 = inlined_call_operand.hbm [shape: f32[4,16], index: 1, kind: input, shape index: {}]   ;;  %s1108_s2 = inlined_call_operand.hbm [shape: f32[128,128], index: 2, kind: input, shape index: {}]   ;;  %s1109_s3 = inlined_call_operand.hbm [shape: f32[16,128], index: 3, kind: input, shape index: {}]   ;;  %s1110_s4 = inlined_call_operand.vmem [shape: f32[1,128], index: 4, kind: input, shape index: {}]   ;;  %s1111_s5 = inlined_call_operand.hbm [shape: f32[128,128], index: 5, kind: input, shape index: {}]   ;;  %s1112_s6 = inlined_call_operand.vmem [shape: f32[1,128], index: 6, kind: input, shape index: {}]   ;;  %s1113_s7 = inlined_call_operand.hbm [shape: f32[128,128], index: 7, kind: input, shape index: {}]   ;;  %s1114_s8 = inlined_call_operand.hbm [shape: f32[4,128], index: 8, kind: output, shape index: {}]  }
   0x1   :  { %14 = vsyncpa [#allocation7], 0 }
   0x2   :  { %15 = vsyncpa [#allocation10], 0 }
   0x3   :  { %16 = vsyncpa [#allocation13], 0 }
   0x4   :  { %17 = vsyncpa [#allocation5], 0  ;;  %s913_s27 = smov [#allocation6]   ;;  %s749_s9 = scalar_lea.hbm %s1107_s1, 64 }
   0x5   :  { %s34_s28 = sshll.u32 %s913_s27, 4  ;;  %p750_p0 = scmp.ne.s32.totalorder %s1107_s1, %s749_s9  ;;  %s35_s28 = int_to_ptr.vmem [resolvable:$true] %s34_s28 }
   0x6   :  { %p753_p1 = scmp.lt.u32.totalorder %s749_s9, %s1107_s1 }
   0x8   :  { %p755_p2 = pnand %p753_p1, %p750_p0 }
   0xa   :  { %758 = shalt.err (!%p755_p2)
}
   0xb   :  { %s759_s14 = scalar_lea.vmem %s35_s28, 64  ;;  %p764_p4 = scmp.lt.s32.totalorder %s35_s28, %s35_s28 }
   0xc   :  { %p760_p3 = scmp.ne.s32.totalorder %s35_s28, %s759_s14  ;;  %p765_p5 = scmp.lt.s32.totalorder %s759_s14, %s759_s14 }
   0xe   :  { %p766_p6 = por %p765_p5, %p764_p4 }
  0x10   :  { %p767_p7 = pnand %p766_p6, %p760_p3 }
  0x12   :  { %770 = shalt.err (!%p767_p7)
}
  0x13   :  { %37 = dma.hbm_to_vmem [thread:$0]  %s1107_s1, 64, %s35_s28, [#allocation7]  }
  0x14   :  { %s914_s17 = smov [#allocation9]   ;;  %s915_s19 = smov [#allocation3]  }
  0x15   :  { %s55_s18 = sshll.u32 %s914_s17, 4  ;;  %s24_s20 = sshll.u32 %s915_s19, 4  ;;  %s56_s18 = int_to_ptr.vmem [resolvable:$true] %s55_s18  ;;  %s25_s20 = int_to_ptr.vmem [resolvable:$true] %s24_s20 }
  0x16   :  { %s771_s23 = scalar_lea.hbm %s1109_s3, 256 }
  0x17   :  { %p772_p8 = scmp.ne.s32.totalorder %s1109_s3, %s771_s23  ;;  %p775_p9 = scmp.lt.u32.totalorder %s771_s23, %s1109_s3 }
  0x19   :  { %p777_p10 = pnand %p775_p9, %p772_p8 }
  0x1b   :  { %780 = shalt.err (!%p777_p10)
}
  0x1c   :  { %s781_s1 = scalar_lea.vmem %s56_s18, 256  ;;  %p786_p12 = scmp.lt.s32.totalorder %s56_s18, %s56_s18 }
  0x1d   :  { %p782_p11 = scmp.ne.s32.totalorder %s56_s18, %s781_s1  ;;  %p787_p13 = scmp.lt.s32.totalorder %s781_s1, %s781_s1 }
  0x1f   :  { %p788_p0 = por %p787_p13, %p786_p12 }
  0x21   :  { %p789_p1 = pnand %p788_p0, %p782_p11 }
  0x23   :  { %792 = shalt.err (!%p789_p1)
}
  0x24   :  { %s916_s28 = smov 128   ;;  %s917_s29 = smov 8  }
  0x25   :  { %61 = dma.hbm_to_vmem [thread:$0]  %s1109_s3, 256, %s56_s18, [#allocation10], %s916_s28, %s916_s28, %s917_s29  }
  0x26   :  { %s793_s12 = scalar_lea.hbm %s1106_s0, 64 }
  0x27   :  { %p794_p2 = scmp.ne.s32.totalorder %s1106_s0, %s793_s12  ;;  %p797_p3 = scmp.lt.u32.totalorder %s793_s12, %s1106_s0 }
  0x29   :  { %p799_p4 = pnand %p797_p3, %p794_p2 }
  0x2b   :  { %802 = shalt.err (!%p799_p4)
}
  0x2c   :  { %s803_s17 = scalar_lea.vmem %s25_s20, 64  ;;  %p808_p6 = scmp.lt.s32.totalorder %s25_s20, %s25_s20 }
  0x2d   :  { %p804_p5 = scmp.ne.s32.totalorder %s25_s20, %s803_s17  ;;  %p809_p7 = scmp.lt.s32.totalorder %s803_s17, %s803_s17 }
  0x2f   :  { %p810_p8 = por %p809_p7, %p808_p6 }
  0x31   :  { %p811_p9 = pnand %p810_p8, %p804_p5 }
  0x33   :  { %814 = shalt.err (!%p811_p9)
}
  0x34   :  { %27 = dma.hbm_to_vmem [thread:$0]  %s1106_s0, 64, %s25_s20, [#allocation4]  }
  0x35   :  { %s918_s19 = smov [#allocation8]   ;;  %s919_s22 = smov [#allocation11]  }
  0x36   :  { %s43_s21 = sshll.u32 %s918_s19, 4  ;;  %s69_s23 = sshll.u32 %s919_s22, 4  ;;  %s44_s21 = int_to_ptr.vmem [resolvable:$true] %s43_s21  ;;  %s70_s23 = int_to_ptr.vmem [resolvable:$true] %s69_s23 }
  0x37   :  { %s815_s26 = scalar_lea.hbm %s1108_s2, 2048 }
  0x38   :  { %p816_p10 = scmp.ne.s32.totalorder %s1108_s2, %s815_s26  ;;  %p819_p11 = scmp.lt.u32.totalorder %s815_s26, %s1108_s2 }
  0x3a   :  { %p821_p12 = pnand %p819_p11, %p816_p10 }
  0x3c   :  { %824 = shalt.err (!%p821_p12)
}
  0x3d   :  { %s825_s0 = scalar_lea.vmem %s44_s21, 2048  ;;  %p830_p0 = scmp.lt.s32.totalorder %s44_s21, %s44_s21 }
  0x3e   :  { %p826_p13 = scmp.ne.s32.totalorder %s44_s21, %s825_s0  ;;  %p831_p1 = scmp.lt.s32.totalorder %s825_s0, %s825_s0 }
  0x40   :  { %p832_p2 = por %p831_p1, %p830_p0 }
  0x42   :  { %p833_p3 = pnand %p832_p2, %p826_p13 }
  0x44   :  { %836 = shalt.err (!%p833_p3)
}
  0x45   :  { %49 = dma.hbm_to_vmem [thread:$0]  %s1108_s2, 2048, %s44_s21, [#allocation7], %s916_s28, %s916_s28, %s917_s29  }
  0x46   :  { %s837_s13 = scalar_lea.hbm %s1111_s5, 2048 }
  0x47   :  { %p838_p4 = scmp.ne.s32.totalorder %s1111_s5, %s837_s13  ;;  %p841_p5 = scmp.lt.u32.totalorder %s837_s13, %s1111_s5 }
  0x49   :  { %p843_p6 = pnand %p841_p5, %p838_p4 }
  0x4b   :  { %846 = shalt.err (!%p843_p6)
}
  0x4c   :  { %s847_s3 = scalar_lea.vmem %s70_s23, 2048  ;;  %p852_p8 = scmp.lt.s32.totalorder %s70_s23, %s70_s23 }
  0x4d   :  { %p848_p7 = scmp.ne.s32.totalorder %s70_s23, %s847_s3  ;;  %p853_p9 = scmp.lt.s32.totalorder %s847_s3, %s847_s3 }
  0x4f   :  { %p854_p10 = por %p853_p9, %p852_p8 }
  0x51   :  { %p855_p11 = pnand %p854_p10, %p848_p7 }
  0x53   :  { %858 = shalt.err (!%p855_p11)
}
  0x54   :  { %75 = dma.hbm_to_vmem [thread:$0]  %s1111_s5, 2048, %s70_s23, [#allocation10], %s916_s28, %s916_s28, %s917_s29  }
  0x55   :  { %s920_s19 = smov [#allocation12]   ;;  %s859_s25 = scalar_lea.hbm %s1113_s7, 2048 }
  0x56   :  { %s83_s21 = sshll.u32 %s920_s19, 4  ;;  %p860_p12 = scmp.ne.s32.totalorder %s1113_s7, %s859_s25  ;;  %s84_s21 = int_to_ptr.vmem [resolvable:$true] %s83_s21 }
  0x57   :  { %p863_p13 = scmp.lt.u32.totalorder %s859_s25, %s1113_s7 }
  0x59   :  { %p865_p0 = pnand %p863_p13, %p860_p12 }
  0x5b   :  { %868 = shalt.err (!%p865_p0)
}
  0x5c   :  { %s869_s9 = scalar_lea.vmem %s84_s21, 2048  ;;  %p874_p2 = scmp.lt.s32.totalorder %s84_s21, %s84_s21 }
  0x5d   :  { %p870_p1 = scmp.ne.s32.totalorder %s84_s21, %s869_s9  ;;  %p875_p3 = scmp.lt.s32.totalorder %s869_s9, %s869_s9 }
  0x5f   :  { %p876_p4 = por %p875_p3, %p874_p2 }
  0x61   :  { %p877_p5 = pnand %p876_p4, %p870_p1 }
  0x63   :  { %880 = shalt.err (!%p877_p5)
}
  0x64   :  { %89 = dma.hbm_to_vmem [thread:$0]  %s1113_s7, 2048, %s84_s21, [#allocation13], %s916_s28, %s916_s28, %s917_s29  }
  0x65   :  { %903 = dma.done.wait [#allocation4], 64  }
  0x66   :  { %904 = vsyncadd [#allocation4], 4294967232 }
  0x67   :  { %905 = dma.done.wait [#allocation7], 2112  }
  0x68   :  { %906 = vsyncadd [#allocation7], 4294965184 }
  0x69   :  { %907 = dma.done.wait [#allocation10], 2304  }
  0x6a   :  { %908 = vsyncadd [#allocation10], 4294964992 }
  0x6b   :  { %909 = dma.done.wait [#allocation13], 2048  }
  0x6c   :  { %910 = vsyncadd [#allocation13], 4294965248  ;;  %v921_v0 = vmov 0.0|0.0   ;;  %vm922_vm0 = vmmov 0   ;;  %v923_v1 = vmov 0.0   ;;  %v115_v2 = vld [vmem:[#allocation8] sm:$0xff] }
  0x6d   :  { %662 = vmatprep.subr.bf16.mxu0 %v921_v0  ;;  %582 = vmatprep.mubr.msk.f32.mxu0 %vm922_vm0, %v923_v1  ;;  %112 = vst [vmem:[#allocation2] sm:$0xf] %v923_v1  ;;  %v116_v3 = vld [vmem:[#allocation8 + $0x8] sm:$0xff]  ;;  %v117_v4 = vld [vmem:[#allocation8 + $0x10] sm:$0xff]  ;;  %v118_v6 = vld [vmem:[#allocation8 + $0x18] sm:$0xff]  ;;  %vm210_vm1 = vcmask 130048  }
  0x6e   :  { %686 = vmatprep.subr.bf16.mxu1 %v921_v0  ;;  %589 = vmatprep.mubr.msk.f32.mxu1 %vm922_vm0, %v923_v1  ;;  %v663_v5 = vpack.c.bf16 %v116_v3, %v115_v2  ;;  %v666_v7 = vpack.c.bf16 %v118_v6, %v117_v4  ;;  %v119_v8 = vld [vmem:[#allocation8 + $0x20] sm:$0xff]  ;;  %v120_v9 = vld [vmem:[#allocation8 + $0x28] sm:$0xff]  ;;  %v294_v12 = vld [vmem:[#allocation11] sm:$0xff]  ;;  %s924_s20 = smov [#allocation14]  }
  0x6f   :  { %v208_v10 = vld [vmem:[#allocation9] sm:$0xff]  ;;  %v209_v11 = vld [vmem:[#allocation9 + $0x8] sm:$0xff]  ;;  %v669_v13 = vpack.c.bf16 %v120_v9, %v119_v8  ;;  %v295_v15 = vld [vmem:[#allocation11 + $0x8] sm:$0xff]  ;;  %s481_s10 = sshll.u32 %s924_s20, 4  ;;  %s482_s10 = int_to_ptr.vmem [resolvable:$true] %s481_s10 }
  0x70   :  { %664 = vmatpush3.bf16.msra.mxu0 %v663_v5  ;;  %v687_v14 = vpack.c.bf16 %v209_v11, %v208_v10  ;;  %v121_v16 = vld [vmem:[#allocation8 + $0x30] sm:$0xff]  ;;  %v122_v17 = vld [vmem:[#allocation8 + $0x38] sm:$0xff]  ;;  %v690_v19 = vpack.c.bf16 %v295_v15, %v294_v12  ;;  %v296_v20 = vld [vmem:[#allocation11 + $0x10] sm:$0xff]  ;;  %p886_p7 = scmp.lt.s32.totalorder %s482_s10, %s482_s10 }
  0x71   :  { %665 = vmatprep.subr.bf16.mxu0 %v921_v0  ;;  %v207_v18 = vld [vmem:[#allocation6] sm:$0xf]  ;;  %v297_v21 = vld [vmem:[#allocation11 + $0x18] sm:$0xff]  ;;  %v672_v22 = vpack.c.bf16 %v122_v17, %v121_v16  ;;  %v123_v23 = vld [vmem:[#allocation8 + $0x40] sm:$0xff] }
  0x72   :  { %688 = vmatpush3.bf16.msra.mxu1 %v687_v14  ;;  %v124_v24 = vld [vmem:[#allocation8 + $0x48] sm:$0xff]  ;;  %v693_v25 = vpack.c.bf16 %v297_v21, %v296_v20  ;;  %v298_v26 = vld [vmem:[#allocation11 + $0x20] sm:$0xff]  ;;  %v299_v27 = vld [vmem:[#allocation11 + $0x28] sm:$0xff] }
  0x73   :  { %689 = vmatprep.subr.bf16.mxu1 %v921_v0  ;;  %v675_v28 = vpack.c.bf16 %v124_v24, %v123_v23  ;;  %v125_v29 = vld [vmem:[#allocation8 + $0x50] sm:$0xff]  ;;  %v126_v30 = vld [vmem:[#allocation8 + $0x58] sm:$0xff]  ;;  %v696_v31 = vpack.c.bf16 %v299_v27, %v298_v26  ;;  %v300_v32 = vld [vmem:[#allocation11 + $0x30] sm:$0xff] }
  0x74   :  { %667 = vmatpush3.bf16.msra.mxu0 %v666_v7  ;;  %v301_v33 = vld [vmem:[#allocation11 + $0x38] sm:$0xff]  ;;  %v678_v34 = vpack.c.bf16 %v126_v30, %v125_v29  ;;  %v127_v35 = vld [vmem:[#allocation8 + $0x60] sm:$0xff]  ;;  %v129_v39 = vld [vmem:[#allocation8 + $0x70] sm:$0xff] }
  0x75   :  { %668 = vmatprep.subr.bf16.mxu0 %v921_v0  ;;  %590 = vmatmul.mubr.msk.f32.vlgmr.msra.gmra.mrb[0].mxu1 %vm210_vm1, %v207_v18  ;;  %v128_v36 = vld [vmem:[#allocation8 + $0x68] sm:$0xff]  ;;  %v699_v37 = vpack.c.bf16 %v301_v33, %v300_v32  ;;  %v130_v40 = vld [vmem:[#allocation8 + $0x78] sm:$0xff]  ;;  %v302_v43 = vld [vmem:[#allocation11 + $0x40] sm:$0xff] }
  0x76   :  { %691 = vmatpush3.bf16.msra.mxu1 %v690_v19  ;;  %624 = vmatprep.mubr.msk.f32.mxu1 %vm922_vm0, %v923_v1  ;;  %v681_v38 = vpack.c.bf16 %v128_v36, %v127_v35  ;;  %v684_v41 = vpack.c.bf16 %v130_v40, %v129_v39  ;;  %v114_v42 = vld [vmem:[#allocation3] sm:$0xf]  ;;  %v304_v46 = vld [vmem:[#allocation11 + $0x50] sm:$0xff]  ;;  %v305_v47 = vld [vmem:[#allocation11 + $0x58] sm:$0xff] }
  0x77   :  { %692 = vmatprep.subr.bf16.mxu1 %v921_v0  ;;  %v303_v44 = vld [vmem:[#allocation11 + $0x48] sm:$0xff]  ;;  %v705_v48 = vpack.c.bf16 %v305_v47, %v304_v46  ;;  %v306_v49 = vld [vmem:[#allocation11 + $0x60] sm:$0xff]  ;;  %v308_v52 = vld [vmem:[#allocation11 + $0x70] sm:$0xff] }
  0x78   :  { %670 = vmatpush3.bf16.msra.mxu0 %v669_v13  ;;  %v702_v45 = vpack.c.bf16 %v303_v44, %v302_v43  ;;  %v307_v50 = vld [vmem:[#allocation11 + $0x68] sm:$0xff]  ;;  %v309_v53 = vld [vmem:[#allocation11 + $0x78] sm:$0xff]  ;;  %v388_v55 = vld [vmem:[#allocation12] sm:$0xff] }
  0x79   :  { %671 = vmatprep.subr.bf16.mxu0 %v921_v0  ;;  %v708_v51 = vpack.c.bf16 %v307_v50, %v306_v49  ;;  %v711_v54 = vpack.c.bf16 %v309_v53, %v308_v52  ;;  %v389_v56 = vld [vmem:[#allocation12 + $0x8] sm:$0xff]  ;;  %v390_v57 = vld [vmem:[#allocation12 + $0x10] sm:$0xff]  ;;  %v391_v59 = vld [vmem:[#allocation12 + $0x18] sm:$0xff] }
  0x7a   :  { %694 = vmatpush3.bf16.msra.mxu1 %v693_v25  ;;  %v714_v58 = vpack.c.bf16 %v389_v56, %v388_v55  ;;  %v717_v60 = vpack.c.bf16 %v391_v59, %v390_v57  ;;  %v392_v61 = vld [vmem:[#allocation12 + $0x20] sm:$0xff]  ;;  %v393_v62 = vld [vmem:[#allocation12 + $0x28] sm:$0xff]  ;;  %v395_v2 = vld [vmem:[#allocation12 + $0x38] sm:$0xff] }
  0x7b   :  { %695 = vmatprep.subr.bf16.mxu1 %v921_v0  ;;  %v720_v63 = vpack.c.bf16 %v393_v62, %v392_v61  ;;  %v396_v4 = vld [vmem:[#allocation12 + $0x40] sm:$0xff]  ;;  %v397_v5 = vld [vmem:[#allocation12 + $0x48] sm:$0xff]  ;;  %v398_v7 = vld [vmem:[#allocation12 + $0x50] sm:$0xff] }
  0x7c   :  { %673 = vmatpush3.bf16.msra.mxu0 %v672_v22  ;;  %v726_v6 = vpack.c.bf16 %v397_v5, %v396_v4  ;;  %v399_v8 = vld [vmem:[#allocation12 + $0x58] sm:$0xff]  ;;  %v400_v10 = vld [vmem:[#allocation12 + $0x60] sm:$0xff]  ;;  %v401_v11 = vld [vmem:[#allocation12 + $0x68] sm:$0xff] }
  0x7d   :  { %674 = vmatprep.subr.bf16.mxu0 %v921_v0  ;;  %v729_v9 = vpack.c.bf16 %v399_v8, %v398_v7  ;;  %v732_v12 = vpack.c.bf16 %v401_v11, %v400_v10  ;;  %v113_v15 = vld [vmem:[#allocation2] sm:$0xf]  ;;  %v402_v24 = vld [vmem:[#allocation12 + $0x70] sm:$0xff]  ;;  %v403_v25 = vld [vmem:[#allocation12 + $0x78] sm:$0xff] }
  0x7e   :  { %697 = vmatpush3.bf16.msra.mxu1 %v696_v31  ;;  %v494_v20 = vld [vmem:[%s1110_s4] ss:$0 sm:$0xff]  ;;  %v735_v26 = vpack.c.bf16 %v403_v25, %v402_v24  ;;  %s881_s4 = scalar_lea.vmem %s482_s10, 64 }
  0x7f   :  { %698 = vmatprep.subr.bf16.mxu1 %v921_v0  ;;  %p882_p6 = scmp.ne.s32.totalorder %s482_s10, %s881_s4  ;;  %p887_p8 = scmp.lt.s32.totalorder %s881_s4, %s881_s4 }
  0x80   :  { %676 = vmatpush3.bf16.msra.mxu0 %v675_v28 }
  0x81   :  { %677 = vmatprep.subr.bf16.mxu0 %v921_v0  ;;  %p888_p9 = por %p887_p8, %p886_p7 }
  0x82   :  { %700 = vmatpush3.bf16.msra.mxu1 %v699_v37 }
  0x83   :  { %701 = vmatprep.subr.bf16.mxu1 %v921_v0  ;;  %p889_p10 = pnand %p888_p9, %p882_p6 }
  0x84   :  { %679 = vmatpush3.bf16.msra.mxu0 %v678_v34 }
  0x85   :  { %680 = vmatprep.subr.bf16.mxu0 %v921_v0 }
  0x86   :  { %703 = vmatpush3.bf16.msra.mxu1 %v702_v45 }
  0x87   :  { %704 = vmatprep.subr.bf16.mxu1 %v921_v0 }
  0x88   :  { %682 = vmatpush3.bf16.msra.mxu0 %v681_v38 }
  0x89   :  { %683 = vmatprep.subr.bf16.mxu0 %v921_v0 }
  0x8a   :  { %706 = vmatpush3.bf16.msra.mxu1 %v705_v48 }
  0x8b   :  { %707 = vmatprep.subr.bf16.mxu1 %v921_v0 }
  0x8c   :  { %685 = vmatpush3.bf16.msra.mxu0 %v684_v41 }
  0x8d   :  { %713 = vmatprep.subr.bf16.mxu0 %v921_v0 }
  0x8e   :  { %709 = vmatpush3.bf16.msra.mxu1 %v708_v51 }
  0x8f   :  { %583 = vmatmul.mubr.f32.vlgmr.msra.gmra.mrb[0].mxu0 %v114_v42  ;;  %710 = vmatprep.subr.bf16.mxu1 %v921_v0 }
  0x90   :  { %659 = vmatprep.mubr.msk.f32.mxu0 %vm922_vm0, %v923_v1  ;;  %715 = vmatpush3.bf16.msra.mxu0 %v714_v58  ;;  %v394_v1 = vld [vmem:[#allocation12 + $0x30] sm:$0xff] }
  0x91   :  { %716 = vmatprep.subr.bf16.mxu0 %v921_v0  ;;  %v723_v3 = vpack.c.bf16 %v395_v2, %v394_v1 }
  0x92   :  { %712 = vmatpush3.bf16.msra.mxu1 %v711_v54 }
  0x94   :  { %718 = vmatpush3.bf16.msra.mxu0 %v717_v60 }
  0x95   :  { %719 = vmatprep.subr.bf16.mxu0 %v921_v0 }
  0x98   :  { %721 = vmatpush3.bf16.msra.mxu0 %v720_v63 }
  0x99   :  { %722 = vmatprep.subr.bf16.mxu0 %v921_v0 }
  0x9c   :  { %724 = vmatpush3.bf16.msra.mxu0 %v723_v3 }
  0x9d   :  { %725 = vmatprep.subr.bf16.mxu0 %v921_v0 }
  0xa0   :  { %727 = vmatpush3.bf16.msra.mxu0 %v726_v6 }
  0xa1   :  { %728 = vmatprep.subr.bf16.mxu0 %v921_v0 }
  0xa4   :  { %730 = vmatpush3.bf16.msra.mxu0 %v729_v9 }
  0xa5   :  { %731 = vmatprep.subr.bf16.mxu0 %v921_v0 }
  0xa8   :  { %733 = vmatpush3.bf16.msra.mxu0 %v732_v12 }
  0xa9   :  { %734 = vmatprep.subr.bf16.mxu0 %v921_v0  ;;  %v495_v0 = vld [vmem:[%s1112_s6] ss:$0 sm:$0xff] }
  0xac   :  { %736 = vmatpush3.bf16.msra.mxu0 %v735_v26 }
 0x148   :  { %v280_v13 = vpop.f32.mrb[0].mxu1 }
 0x149   :  { %v591_v14 = vpop.f32.mrb[1].mxu1 }
 0x162   :  { %v197_v16 = vpop.f32.mrb[0].mxu0 }
 0x163   :  { %v201_v17 = vadd.f32 %v197_v16, %v113_v15  ;;  %v584_v18 = vpop.f32.mrb[1].mxu0 }
 0x165   :  { %202 = vst [vmem:[#allocation2] sm:$0xf] %v201_v17 }
 0x16c   :  { %v206_v19 = vld [vmem:[#allocation2] sm:$0xf] }
 0x16d   :  { %v284_v21 = vadd.f32 %v280_v13, %v206_v19 }
 0x16f   :  { %v292_v22 = vadd.f32 %v494_v20, %v284_v21 }
 0x171   :  { %v293_v23 = vmax.f32 %v292_v22, 0.0 }
 0x173   :  { %625 = vmatmul.mubr.f32.vlgmr.msra.gmra.mrb[2].mxu1 %v293_v23 }
 0x246   :  { %v383_v27 = vpop.f32.mrb[2].mxu1 }
 0x247   :  { %v384_v28 = vadd.f32 %v495_v0, %v383_v27  ;;  %v626_v29 = vpop.f32.mrb[3].mxu1 }
 0x249   :  { %v387_v30 = vmax.f32 %v384_v28, 0.0 }
 0x24b   :  { %660 = vmatmul.mubr.f32.vlgmr.msra.gmra.mrb[2].mxu0 %v387_v30 }
 0x31e   :  { %v470_v31 = vpop.f32.mrb[2].mxu0 }
 0x31f   :  { %474 = vst [vmem:[#allocation14] sm:$0xf] %v470_v31  ;;  %v661_v32 = vpop.f32.mrb[3].mxu0 }
 0x320   :  { %892 = shalt.err (!%p889_p10)
}
 0x321   :  { %s893_s12 = scalar_lea.hbm %s1114_s8, 64 }
 0x322   :  { %p894_p11 = scmp.ne.s32.totalorder %s1114_s8, %s893_s12  ;;  %p897_p12 = scmp.lt.u32.totalorder %s893_s12, %s1114_s8 }
 0x324   :  { %p899_p13 = pnand %p897_p12, %p894_p11 }
 0x326   :  { %902 = shalt.err (!%p899_p13)
}
 0x327   :  { %484 = dma.vmem_to_hbm [thread:$0]  %s482_s10, 64, %s1114_s8, [#allocation5]  }
 0x328   :  { %911 = dma.done.wait [#allocation5], 64  }
 0x329   :  { %912 = vsyncadd [#allocation5], 4294967232 }
 0x32a   :  { %488 = vsyncpa [#allocation4], 1 }
 0x32b   :  { %489 = vsyncpa [#allocation7], 1 }
 0x32c   :  { %490 = vsyncpa [#allocation10], 1 }
 0x32d   :  { %491 = vsyncpa [#allocation13], 1 }
 0x32e   :  { %492 = vsyncpa [#allocation5], 1 }

</bundles_post_ra>
